<compile_context>
chip_gen: v7x
topology: tpu7x:2x2x1
jax: 0.10.0
libtpu: 0.0.40
codegen_flags: <defaults>
</compile_context>

<pallas_src>
import math

import jax
import jax.numpy as jnp
from jax.experimental import pallas as pl
from jax.experimental.pallas import tpu as pltpu

_SMALL_BYTES = 4 * 1024 * 1024      # single-block fast-path threshold
_TILE_BYTES = 8 * 1024 * 1024       # per-block budget for the tiled slab copy
_VMEM_LIMIT = 48 * 1024 * 1024      # 4 x tile (in+out, double-buffered) + slack
_MAX_LANE = 2048                    # largest lane-tile width considered


def _copy_kernel(x_ref, o_ref):
    # Lane-dense identity copy of one block.
    o_ref[...] = x_ref[...]


def _round_up(a, b):
    return ((a + b - 1) // b) * b


def _sublane_multiple(itemsize):
    # Native sublane packing: 8 rows for 4-byte, 16 for 2-byte, 32 for 1-byte.
    return max(8, 32 // max(1, itemsize))


def _pick_lane_width(total):
    # Largest multiple-of-128 divisor of `total` (capped at _MAX_LANE) so every
    # store is a full-width unmasked vst and no lane-dim block is ragged.
    for lane in range(_MAX_LANE, 0, -128):
        if total % lane == 0:
            return lane
    return None


def flatten_1d(x: jax.Array) -> jax.Array:
    n = x.shape[0]
    flat = math.prod(x.shape[1:]) if len(x.shape) > 1 else 1

    # Metadata-only collapse (exactly torch's .view on contiguous NCHW).
    # TODO(synk): in a real model, return x2 directly (zero HBM traffic) or fuse
    # the flatten into the consumer kernel's BlockSpec; the copy kernel below
    # exists only because a Pallas kernel is required for this layer.
    x2 = jnp.reshape(x, (n, flat))

    itemsize = jnp.dtype(x.dtype).itemsize
    total = n * flat
    total_bytes = total * itemsize
    sub = _sublane_multiple(itemsize)

    # ---- Fast path: whole array as one block (one DMA in, one DMA out). ----
    if total_bytes <= _SMALL_BYTES:
        return pl.pallas_call(
            _copy_kernel,
            out_shape=jax.ShapeDtypeStruct((n, flat), x.dtype),
            compiler_params=pltpu.CompilerParams(vmem_limit_bytes=_VMEM_LIMIT),
        )(x2)

    # ---- Slab path: copy layout decoupled from the logical (n, flat). ------
    lane = _pick_lane_width(total)
    if lane is not None:
        rows = total // lane
        slab = jnp.reshape(x2, (rows, lane))            # metadata-only

        budget_rows = max(sub, (_TILE_BYTES // (lane * itemsize)) // sub * sub)
        # Cap at ~half the rows (rounded to the sublane multiple) so the
        # parallel grid axis has >= 2 programs -> megacore split on v7x.
        half_rows = max(sub, _round_up(pl.cdiv(rows, 2), sub))
        tile_rows = min(budget_rows, half_rows)

        grid = (pl.cdiv(rows, tile_rows),)
        out = pl.pallas_call(
            _copy_kernel,
            out_shape=jax.ShapeDtypeStruct((rows, lane), x.dtype),
            grid=grid,
            in_specs=[pl.BlockSpec((tile_rows, lane), lambda i: (i, 0))],
            out_specs=pl.BlockSpec((tile_rows, lane), lambda i: (i, 0)),
            compiler_params=pltpu.CompilerParams(
                dimension_semantics=("parallel",),
                vmem_limit_bytes=_VMEM_LIMIT,
            ),
        )(slab)
        return jnp.reshape(out, (n, flat))              # metadata-only

    # ---- Fallback: total not a multiple of 128 (rare for NCHW flatten). ----
    # Lane dim = full flat extent (legal: equals the full array dim); rows are
    # tiled under the byte budget when n is a multiple of the sublane packing.
    if n % sub == 0:
        budget_rows = max(sub, (_TILE_BYTES // max(1, flat * itemsize)) // sub * sub)
        tile_rows = min(n, budget_rows)
    else:
        tile_rows = n
    grid = (pl.cdiv(n, tile_rows),)
    return pl.pallas_call(
        _copy_kernel,
        out_shape=jax.ShapeDtypeStruct((n, flat), x.dtype),
        grid=grid,
        in_specs=[pl.BlockSpec((tile_rows, flat), lambda i: (i, 0))],
        out_specs=pl.BlockSpec((tile_rows, flat), lambda i: (i, 0)),
        compiler_params=pltpu.CompilerParams(
            dimension_semantics=("parallel",),
            vmem_limit_bytes=_VMEM_LIMIT,
        ),
    )(x2)


if __name__ == "__main__":
    key = jax.random.PRNGKey(0)

    # Small NCHW input matching the module's forward (single-block fast path).
    x = jax.random.normal(key, (2, 4, 16, 16), dtype=jnp.float32)
    y = flatten_1d(x)
    jax.block_until_ready(y)
    y_ref = x.reshape(x.shape[0], -1)
    assert y.shape == (2, 4 * 16 * 16), y.shape
    assert jnp.array_equal(y, y_ref), "mismatch vs reference flatten (small path)"

    # Medium input to exercise the tiled lane-dense slab path (>= 2 programs).
    x_big = jax.random.normal(key, (32, 16, 64, 64), dtype=jnp.float32)
    y_big = flatten_1d(x_big)
    jax.block_until_ready(y_big)
    assert y_big.shape == (32, 16 * 64 * 64), y_big.shape
    assert jnp.array_equal(y_big, x_big.reshape(32, -1)), \
        "mismatch vs reference flatten (slab path)"

    print("KERNEL_OK")
</pallas_src>

<mosaic_0001>
module attributes {stable_mosaic.version = 11 : i64} {
  func.func @_copy_kernel(%arg0: memref<2x1024xf32, #tpu.memory_space<vmem>>, %arg1: memref<2x1024xf32, #tpu.memory_space<vmem>>) attributes {dimension_semantics = [], scalar_prefetch = 0 : i64, scratch_operands = 0 : i64, tpu.core_type = #tpu.core_type<tc>} {
    %c0 = arith.constant 0 : index
    %c0_0 = arith.constant 0 : index
    %0 = vector.load %arg0[%c0, %c0_0] : memref<2x1024xf32, #tpu.memory_space<vmem>>, vector<2x1024xf32>
    %c0_1 = arith.constant 0 : index
    %c0_2 = arith.constant 0 : index
    %1 = vector.load %arg1[%c0_1, %c0_2] : memref<2x1024xf32, #tpu.memory_space<vmem>>, vector<2x1024xf32>
    tpu.vector_store %arg1[%c0_1, %c0_2], %0 {strides = array<i32>} : memref<2x1024xf32, #tpu.memory_space<vmem>>, vector<2x1024xf32>,
    return
  }
}

</mosaic_0001>

<bundles_post_ra>
// kernel: tpu_custom_call.1
= control target key start
LH: loop header
LB: loop body
LE: loop exit
PB: predicated region body
PF: predicated region fallthrough
CT: control target
= control target key end

     0   :  { %6 = vsyncpa [#allocation3], 0  ;;  %s126_s0 = inlined_call_operand.hbm [shape: f32[2,1024], index: 0, kind: input, shape index: {}]   ;;  %s127_s1 = inlined_call_operand.hbm [shape: f32[2,1024], index: 1, kind: output, shape index: {}]  }
   0x1   :  { %7 = vsyncpa [#allocation4], 0  ;;  %s90_s6 = smov [#allocation2]   ;;  %s42_s10 = scalar_lea.hbm %s126_s0, 256 }
   0x2   :  { %s14_s7 = sshll.u32 %s90_s6, 4  ;;  %p43_p0 = scmp.ne.s32.totalorder %s126_s0, %s42_s10  ;;  %s15_s7 = int_to_ptr.vmem [resolvable:$true] %s14_s7 }
   0x3   :  { %p46_p1 = scmp.lt.u32.totalorder %s42_s10, %s126_s0 }
   0x5   :  { %p48_p2 = pnand %p46_p1, %p43_p0 }
   0x7   :  { %51 = shalt.err (!%p48_p2)
}
   0x8   :  { %s52_s15 = scalar_lea.vmem %s15_s7, 256  ;;  %p57_p4 = scmp.lt.s32.totalorder %s15_s7, %s15_s7 }
   0x9   :  { %p53_p3 = scmp.ne.s32.totalorder %s15_s7, %s52_s15  ;;  %p58_p5 = scmp.lt.s32.totalorder %s52_s15, %s52_s15 }
   0xb   :  { %p59_p6 = por %p58_p5, %p57_p4 }
   0xd   :  { %p60_p7 = pnand %p59_p6, %p53_p3 }
   0xf   :  { %63 = shalt.err (!%p60_p7)
}
  0x10   :  { %17 = dma.hbm_to_vmem [thread:$0]  %s126_s0, 256, %s15_s7, [#allocation3]  }
  0x11   :  { %86 = dma.done.wait [#allocation3], 256  }
  0x12   :  { %87 = vsyncadd [#allocation3], 4294967040  ;;  %s91_s18 = smov [#allocation5]   ;;  %v21_v0 = vld [vmem:[#allocation2] sm:$0xff]  ;;  %v22_v1 = vld [vmem:[#allocation2 + $0x8] sm:$0xff] }
  0x13   :  { %s31_s19 = sshll.u32 %s91_s18, 4  ;;  %23 = vst [vmem:[#allocation5] sm:$0xff] %v21_v0  ;;  %24 = vst [vmem:[#allocation5 + $0x8] sm:$0xff] %v22_v1  ;;  %s32_s19 = int_to_ptr.vmem [resolvable:$true] %s31_s19 }
  0x14   :  { %s64_s20 = scalar_lea.vmem %s32_s19, 256  ;;  %p69_p9 = scmp.lt.s32.totalorder %s32_s19, %s32_s19 }
  0x15   :  { %p65_p8 = scmp.ne.s32.totalorder %s32_s19, %s64_s20  ;;  %p70_p10 = scmp.lt.s32.totalorder %s64_s20, %s64_s20 }
  0x17   :  { %p71_p11 = por %p70_p10, %p69_p9 }
  0x19   :  { %p72_p12 = pnand %p71_p11, %p65_p8 }
  0x1b   :  { %75 = shalt.err (!%p72_p12)
}
  0x1c   :  { %s76_s0 = scalar_lea.hbm %s127_s1, 256 }
  0x1d   :  { %p77_p13 = scmp.ne.s32.totalorder %s127_s1, %s76_s0  ;;  %p80_p0 = scmp.lt.u32.totalorder %s76_s0, %s127_s1 }
  0x1f   :  { %p82_p1 = pnand %p80_p0, %p77_p13 }
  0x21   :  { %85 = shalt.err (!%p82_p1)
}
  0x22   :  { %34 = dma.vmem_to_hbm [thread:$0]  %s32_s19, 256, %s127_s1, [#allocation4]  }
  0x23   :  { %88 = dma.done.wait [#allocation4], 256  }
  0x24   :  { %89 = vsyncadd [#allocation4], 4294967040 }
  0x25   :  { %38 = vsyncpa [#allocation3], 1 }
  0x26   :  { %39 = vsyncpa [#allocation4], 1 }

</bundles_post_ra>
